<compile_context>
chip_gen: v7x
topology: tpu7x:2x2x1
jax: 0.10.0
libtpu: 0.0.40
codegen_flags: <defaults>
</compile_context>

<pallas_src>
import jax
import jax.numpy as jnp
from jax.experimental import pallas as pl
from jax.experimental.pallas import tpu as pltpu


def _round_up(x: int, m: int) -> int:
    return ((x + m - 1) // m) * m


def _cdiv(a: int, b: int) -> int:
    return -(-a // b)


def _fit_tile(dim: int, pref: int, align: int):
    """Pick an `align`-aligned tile minimizing padding of `dim`.

    Returns (tile, padded_dim, grid) with padded_dim == tile * grid >= dim.
    """
    base = _round_up(dim, align)
    grid = max(1, _cdiv(base, max(pref, align)))
    tile = _round_up(_cdiv(base, grid), align)
    return tile, tile * grid, grid


def _pick_divisor_block(total: int, pref: int, align: int) -> int:
    """Largest multiple of `align` <= min(pref, total) that divides `total`."""
    best = align
    cap = min(max(pref, align), total)
    b = align
    while b <= cap:
        if total % b == 0:
            best = b
        b += align
    return best


def _hw_defaults():
    """Per-generation matmul tiles + VMEM limit (roofline driven)."""
    kind = ""
    try:
        kind = jax.devices()[0].device_kind.lower()
    except Exception:
        pass
    if "v7" in kind:
        # ~3.2 TB/s HBM per TC but only 64 MiB VMEM: moderate tiles.
        return 768, 1024, 512, 48 * 1024 * 1024
    if "v6" in kind:
        # 918 TF/s vs ~1.4 TB/s needs ~650 FLOP/byte -> 1024x2048 crosses it.
        return 1024, 2048, 512, 64 * 1024 * 1024
    if "v5e" in kind or "v5 lite" in kind or "v5lite" in kind:
        # 197 TF/s vs ~0.82 TB/s: 512x512 bf16 tiles are already MXU-bound.
        return 512, 512, 512, 32 * 1024 * 1024
    # Unknown / other (v4, v5p, interpret): conservative middle ground.
    return 512, 1024, 512, 48 * 1024 * 1024


# ---------------------------------------------------------------------------
# Kernels
# ---------------------------------------------------------------------------

def _exp_kernel(w_ref, o_ref):
    # f32 exp on the EUP, packed to bf16 (halves W DMA bytes into the matmul).
    o_ref[...] = jnp.exp(w_ref[...]).astype(o_ref.dtype)


def _matmul_kernel(x_ref, w_ref, o_ref):
    # x_ref: (tm, tk) bf16, w_ref: (tk, tn) bf16 = exp(W), o_ref: (tm, tn) f32.
    @pl.when(pl.program_id(2) == 0)
    def _():
        o_ref[...] = jnp.zeros_like(o_ref)

    # bf16 x bf16 -> f32 accumulation on the MXU, directly into the resident
    # output block (no scratch accumulator, no finalize copy).
    o_ref[...] += jnp.dot(x_ref[...], w_ref[...],
                          preferred_element_type=jnp.float32)


def _fused_matmul_kernel(x_ref, w_ref, o_ref):
    # Single-M-tile fast path: exp on the f32 W tile in-kernel.  Each W tile
    # is visited exactly once (grid_m == 1), so the EUP cost is identical to
    # the hoisted pass but the extra exp(W) HBM round trip is avoided.
    @pl.when(pl.program_id(2) == 0)
    def _():
        o_ref[...] = jnp.zeros_like(o_ref)

    w_exp = jnp.exp(w_ref[...]).astype(jnp.bfloat16)
    o_ref[...] += jnp.dot(x_ref[...], w_exp,
                          preferred_element_type=jnp.float32)


# ---------------------------------------------------------------------------
# Wrapper
# ---------------------------------------------------------------------------

def positive_linear(x: jax.Array, weight: jax.Array, *,
                    tm: int | None = None, tn: int | None = None,
                    tk: int | None = None,
                    vmem_limit_bytes: int | None = None) -> jax.Array:
    """Compute x @ exp(weight) with tiled, pipelined Pallas TPU kernels.

    x: (B, in_features) float32
    weight: (in_features, out_features) float32
    returns: (B, out_features) float32
    """
    B, K = x.shape
    K2, N = weight.shape
    assert K == K2, "in_features mismatch"

    d_tm, d_tn, d_tk, d_vmem = _hw_defaults()
    tm = d_tm if tm is None else tm
    tn = d_tn if tn is None else tn
    tk = d_tk if tk is None else tk
    vmem_limit_bytes = d_vmem if vmem_limit_bytes is None else vmem_limit_bytes

    tm, m_pad, gm = _fit_tile(B, tm, 8)
    tk, k_pad, gk = _fit_tile(K, tk, 128)
    tn, n_pad, gn = _fit_tile(N, tn, 128)

    # x: cast to bf16 once (halves DMA + VMEM); zero-pad so padded K columns
    # contribute exactly 0 and block shapes obey the (8, 128) rule.
    x_bf = x.astype(jnp.bfloat16)
    if (m_pad, k_pad) != (B, K):
        x_bf = jnp.pad(x_bf, ((0, m_pad - B), (0, k_pad - K)))

    # W: tk/tn divide round_up(K/N, 128), so 128-aligned weights are never
    # copied; ragged K/N fall back to a zero pad (exp(0)=1 rows meet the
    # zero-padded x columns -> contribute 0, padded N columns are sliced off).
    # TODO(synk): read unpadded W with edge-masked partial blocks to also
    # avoid this copy for non-128-aligned K/N.
    w_p = weight
    if (k_pad, n_pad) != (K, N):
        w_p = jnp.pad(weight, ((0, k_pad - K), (0, n_pad - N)))

    fused = (gm == 1)

    if fused:
        w_in = w_p                      # f32; exp fused into the matmul tile
        mm_kernel = _fused_matmul_kernel
        w_elem_bytes = 4
        mm_transcendentals = k_pad * n_pad
    else:
        # Pass 1: exp(W) once, with its own large mem-roofline-friendly
        # blocks (decoupled from the matmul's tk/tn), emitting bf16.
        ek = _pick_divisor_block(k_pad, 512, 128)
        en = _pick_divisor_block(n_pad, 2048, 128)
        w_in = pl.pallas_call(
            _exp_kernel,
            out_shape=jax.ShapeDtypeStruct((k_pad, n_pad), jnp.bfloat16),
            grid_spec=pltpu.PrefetchScalarGridSpec(
                num_scalar_prefetch=0,
                grid=(k_pad // ek, n_pad // en),
                in_specs=[pl.BlockSpec((ek, en), lambda i, j: (i, j))],
                out_specs=pl.BlockSpec((ek, en), lambda i, j: (i, j)),
            ),
            compiler_params=pltpu.CompilerParams(
                dimension_semantics=("parallel", "parallel"),
                vmem_limit_bytes=vmem_limit_bytes,
            ),
            cost_estimate=pl.CostEstimate(
                flops=k_pad * n_pad,
                transcendentals=k_pad * n_pad,
                bytes_accessed=k_pad * n_pad * (4 + 2),
            ),
        )(w_p)
        mm_kernel = _matmul_kernel
        w_elem_bytes = 2
        mm_transcendentals = 0

    # Pass 2: (gm, gn, gk) tiled matmul, f32 accumulation into the resident
    # output block, independent axes parallel (megacore / v7x sharding).
    out_p = pl.pallas_call(
        mm_kernel,
        out_shape=jax.ShapeDtypeStruct((m_pad, n_pad), jnp.float32),
        grid_spec=pltpu.PrefetchScalarGridSpec(
            num_scalar_prefetch=0,
            grid=(gm, gn, gk),
            in_specs=[
                pl.BlockSpec((tm, tk), lambda i, j, k: (i, k)),
                pl.BlockSpec((tk, tn), lambda i, j, k: (k, j)),
            ],
            out_specs=pl.BlockSpec((tm, tn), lambda i, j, k: (i, j)),
        ),
        compiler_params=pltpu.CompilerParams(
            dimension_semantics=("parallel", "parallel", "arbitrary"),
            vmem_limit_bytes=vmem_limit_bytes,
        ),
        cost_estimate=pl.CostEstimate(
            flops=2 * m_pad * n_pad * k_pad,
            transcendentals=mm_transcendentals,
            bytes_accessed=(m_pad * k_pad * 2 * gn
                            + k_pad * n_pad * w_elem_bytes * gm
                            + m_pad * n_pad * 4),
        ),
    )(x_bf, w_in)

    return out_p[:B, :N]


if __name__ == "__main__":
    key = jax.random.PRNGKey(0)
    kx, kw, kx2, kw2 = jax.random.split(key, 4)

    # --- Test 1: module-sized shapes (exercises the fused small-M path) ---
    batch, in_features, out_features = 8, 32, 16
    x = jax.random.normal(kx, (batch, in_features), dtype=jnp.float32)
    weight = jax.random.normal(kw, (in_features, out_features),
                               dtype=jnp.float32)

    out = jax.block_until_ready(positive_linear(x, weight))
    ref = x @ jnp.exp(weight)
    assert out.shape == (batch, out_features)
    # Tolerance loosened because MXU operands are bf16 (f32 accumulation).
    assert jnp.allclose(out, ref, rtol=2e-2, atol=5e-1), "mismatch (fused)"

    # --- Test 2: multi-tile path (hoisted exp pass + K-grid accumulation,
    #     ragged N exercising the padding fallback) ---
    B2, K2_, N2 = 256, 384, 200
    x2 = jax.random.normal(kx2, (B2, K2_), dtype=jnp.float32)
    w2 = jax.random.normal(kw2, (K2_, N2), dtype=jnp.float32)
    out2 = jax.block_until_ready(
        positive_linear(x2, w2, tm=128, tn=128, tk=128))
    ref2 = x2 @ jnp.exp(w2)
    assert out2.shape == (B2, N2)
    assert jnp.allclose(out2, ref2, rtol=2e-2, atol=2.0), "mismatch (tiled)"

    print("KERNEL_OK")
</pallas_src>

<mosaic_0001>
module attributes {stable_mosaic.version = 11 : i64} {
  func.func @_fused_matmul_kernel(%arg0: i32, %arg1: i32, %arg2: i32, %arg3: memref<8x128xbf16, #tpu.memory_space<vmem>>, %arg4: memref<128x128xf32, #tpu.memory_space<vmem>>, %arg5: memref<8x128xf32, #tpu.memory_space<vmem>>) attributes {dimension_semantics = [#tpu.dimension_semantics<parallel>, #tpu.dimension_semantics<parallel>, #tpu.dimension_semantics<arbitrary>], iteration_bounds = array<i64: 1, 1, 1>, scalar_prefetch = 0 : i64, scratch_operands = 0 : i64, tpu.core_type = #tpu.core_type<tc>, window_params = [{transform_indices = @transform_0, window_bounds = array<i64: 8, 128>}, {transform_indices = @transform_1, window_bounds = array<i64: 128, 128>}, {transform_indices = @transform_2, window_bounds = array<i64: 8, 128>}]} {
    %c0_i32 = arith.constant 0 : i32
    %0 = arith.cmpi eq, %arg2, %c0_i32 : i32
    %1 = arith.extui %0 : i1 to i32
    %c0_i32_0 = arith.constant 0 : i32
    %2 = arith.cmpi ne, %1, %c0_i32_0 : i32
    scf.if %2 {
      %cst_8 = arith.constant 0.000000e+00 : f32
      %11 = vector.broadcast %cst_8 : f32 to vector<8x128xf32>
      %c0_9 = arith.constant 0 : index
      %c0_10 = arith.constant 0 : index
      %12 = vector.load %arg5[%c0_9, %c0_10] : memref<8x128xf32, #tpu.memory_space<vmem>>, vector<8x128xf32>
      tpu.vector_store %arg5[%c0_9, %c0_10], %11 {strides = array<i32>} : memref<8x128xf32, #tpu.memory_space<vmem>>, vector<8x128xf32>,
    } else {
    }
    %c0 = arith.constant 0 : index
    %c0_1 = arith.constant 0 : index
    %3 = vector.load %arg4[%c0, %c0_1] : memref<128x128xf32, #tpu.memory_space<vmem>>, vector<128x128xf32>
    %4 = math.exp %3 : vector<128x128xf32>
    %5 = arith.truncf %4 : vector<128x128xf32> to vector<128x128xbf16>
    %c0_2 = arith.constant 0 : index
    %c0_3 = arith.constant 0 : index
    %6 = vector.load %arg5[%c0_2, %c0_3] : memref<8x128xf32, #tpu.memory_space<vmem>>, vector<8x128xf32>
    %c0_4 = arith.constant 0 : index
    %c0_5 = arith.constant 0 : index
    %7 = vector.load %arg3[%c0_4, %c0_5] : memref<8x128xbf16, #tpu.memory_space<vmem>>, vector<8x128xbf16>
    %cst = arith.constant dense<0.000000e+00> : vector<8x128xf32>
    %8 = tpu.matmul %7, %5, %cst {dimension_numbers = #tpu.dot_dimension_numbers<[1], [0], [0], [1], [0, 0, 1, 1], [], []>} : vector<8x128xbf16>, vector<128x128xbf16>, vector<8x128xf32> -> vector<8x128xf32>
    %9 = arith.addf %6, %8 : vector<8x128xf32>
    %c0_6 = arith.constant 0 : index
    %c0_7 = arith.constant 0 : index
    %10 = vector.load %arg5[%c0_6, %c0_7] : memref<8x128xf32, #tpu.memory_space<vmem>>, vector<8x128xf32>
    tpu.vector_store %arg5[%c0_6, %c0_7], %9 {strides = array<i32>} : memref<8x128xf32, #tpu.memory_space<vmem>>, vector<8x128xf32>,
    return
  }
  func.func @transform_0(%arg0: i32, %arg1: i32, %arg2: i32) -> (i32, i32) {
    %c0_i32 = arith.constant 0 : i32
    return %arg0, %arg2 : i32, i32
  }
  func.func @transform_1(%arg0: i32, %arg1: i32, %arg2: i32) -> (i32, i32) {
    %c0_i32 = arith.constant 0 : i32
    return %arg2, %arg1 : i32, i32
  }
  func.func @transform_2(%arg0: i32, %arg1: i32, %arg2: i32) -> (i32, i32) {
    %c0_i32 = arith.constant 0 : i32
    return %arg0, %arg1 : i32, i32
  }
}

</mosaic_0001>

<bundles_post_ra>
// kernel: tpu_custom_call.1
= control target key start
LH: loop header
LB: loop body
LE: loop exit
PB: predicated region body
PF: predicated region fallthrough
CT: control target
= control target key end

     0   :  { %7 = vsyncpa [#allocation3], 0  ;;  %s374_s0 = inlined_call_operand.hbm [shape: bf16[8,128], index: 0, kind: input, shape index: {}]   ;;  %s375_s1 = inlined_call_operand.hbm [shape: f32[128,128], index: 1, kind: input, shape index: {}]   ;;  %s376_s2 = inlined_call_operand.hbm [shape: f32[8,128], index: 2, kind: output, shape index: {}]  }
   0x1   :  { %8 = vsyncpa [#allocation6], 0 }
   0x2   :  { %9 = vsyncpa [#allocation4], 0  ;;  %s300_s9 = smov [#allocation2]   ;;  %s301_s11 = smov [#allocation5]  }
   0x3   :  { %s16_s10 = sshll.u32 %s300_s9, 4  ;;  %s25_s12 = sshll.u32 %s301_s11, 4  ;;  %s17_s10 = int_to_ptr.vmem [resolvable:$true] %s16_s10  ;;  %s322_s12 = int_to_ptr.vmem [resolvable:$true] %s25_s12 }
   0x4   :  { %s228_s15 = scalar_lea.hbm %s374_s0, 64 }
   0x5   :  { %p229_p0 = scmp.ne.s32.totalorder %s374_s0, %s228_s15  ;;  %p232_p1 = scmp.lt.u32.totalorder %s228_s15, %s374_s0 }
   0x7   :  { %p234_p2 = pnand %p232_p1, %p229_p0 }
   0x9   :  { %237 = shalt.err (!%p234_p2)
}
   0xa   :  { %s238_s20 = scalar_lea.vmem %s17_s10, 64  ;;  %p243_p4 = scmp.lt.s32.totalorder %s17_s10, %s17_s10 }
   0xb   :  { %p239_p3 = scmp.ne.s32.totalorder %s17_s10, %s238_s20  ;;  %p244_p5 = scmp.lt.s32.totalorder %s238_s20, %s238_s20 }
   0xd   :  { %p245_p6 = por %p244_p5, %p243_p4 }
   0xf   :  { %p246_p7 = pnand %p245_p6, %p239_p3 }
  0x11   :  { %249 = shalt.err (!%p246_p7)
}
  0x12   :  { %19 = dma.hbm_to_vmem [thread:$0]  %s374_s0, 64, %s17_s10, [#allocation3]  }
  0x13   :  { %s250_s25 = scalar_lea.hbm %s375_s1, 2048 }
  0x14   :  { %p251_p8 = scmp.ne.s32.totalorder %s375_s1, %s250_s25  ;;  %p254_p9 = scmp.lt.u32.totalorder %s250_s25, %s375_s1 }
  0x16   :  { %p256_p10 = pnand %p254_p9, %p251_p8 }
  0x18   :  { %259 = shalt.err (!%p256_p10)
}
  0x19   :  { %s260_s30 = scalar_lea.vmem %s322_s12, 2048  ;;  %p265_p12 = scmp.lt.s32.totalorder %s322_s12, %s322_s12 }
  0x1a   :  { %p261_p11 = scmp.ne.s32.totalorder %s322_s12, %s260_s30  ;;  %p266_p13 = scmp.lt.s32.totalorder %s260_s30, %s260_s30 }
  0x1c   :  { %p267_p0 = por %p266_p13, %p265_p12 }
  0x1e   :  { %p268_p1 = pnand %p267_p0, %p261_p11 }
  0x20   :  { %271 = shalt.err (!%p268_p1)
}
  0x21   :  { %s302_s0 = smov 128   ;;  %s303_s3 = smov 8  }
  0x22   :  { %31 = dma.hbm_to_vmem [thread:$0]  %s375_s1, 2048, %s322_s12, [#allocation6], %s302_s0, %s302_s0, %s303_s3  }
  0x23   :  { %294 = dma.done.wait [#allocation3], 64  }
  0x24   :  { %295 = vsyncadd [#allocation3], 4294967232 }
  0x25   :  { %296 = dma.done.wait [#allocation6], 2048  }
  0x26   :  { %297 = vsyncadd [#allocation6], 4294965248  ;;  %v304_v0 = vmov 0.0   ;;  %vm305_vm0 = vmmov 0   ;;  %v44_v1 = vld [vmem:[#allocation5] sm:$0xff]  ;;  %v45_v2 = vld [vmem:[#allocation5 + $0x8] sm:$0xff] }
  0x27   :  { %169 = vmatprep.subr.bf16.mxu0 %v304_v0  ;;  %185 = vmatprep.mubr.msk.bf16.mxu0 %vm305_vm0, %v304_v0  ;;  %v46_v3 = vld [vmem:[#allocation5 + $0x10] sm:$0xff]  ;;  %v60_v4 = vmul.f32 1.442695, %v44_v1  ;;  %v62_v5 = vmul.f32 1.442695, %v45_v2  ;;  %v47_v6 = vld [vmem:[#allocation5 + $0x18] sm:$0xff] }
  0x28   :  { %v48_v7 = vld [vmem:[#allocation5 + $0x20] sm:$0xff]  ;;  %v64_v8 = vmul.f32 1.442695, %v46_v3  ;;  %v66_v9 = vmul.f32 1.442695, %v47_v6  ;;  %v49_v10 = vld [vmem:[#allocation5 + $0x28] sm:$0xff] }
  0x29   :  { %196 = vpow2.f32 %v60_v4  ;;  %v68_v11 = vmul.f32 1.442695, %v48_v7  ;;  %v70_v12 = vmul.f32 1.442695, %v49_v10  ;;  %v50_v13 = vld [vmem:[#allocation5 + $0x30] sm:$0xff]  ;;  %v51_v14 = vld [vmem:[#allocation5 + $0x38] sm:$0xff] }
  0x2a   :  { %198 = vpow2.f32 %v62_v5  ;;  %v72_v15 = vmul.f32 1.442695, %v50_v13  ;;  %v74_v16 = vmul.f32 1.442695, %v51_v14  ;;  %v52_v17 = vld [vmem:[#allocation5 + $0x40] sm:$0xff]  ;;  %v53_v18 = vld [vmem:[#allocation5 + $0x48] sm:$0xff] }
  0x2b   :  { %200 = vpow2.f32 %v64_v8  ;;  %v76_v19 = vmul.f32 1.442695, %v52_v17  ;;  %v78_v20 = vmul.f32 1.442695, %v53_v18  ;;  %v54_v21 = vld [vmem:[#allocation5 + $0x50] sm:$0xff]  ;;  %v55_v23 = vld [vmem:[#allocation5 + $0x58] sm:$0xff] }
  0x2c   :  { %202 = vpow2.f32 %v66_v9  ;;  %v80_v27 = vmul.f32 1.442695, %v54_v21  ;;  %v82_v29 = vmul.f32 1.442695, %v55_v23  ;;  %v56_v30 = vld [vmem:[#allocation5 + $0x60] sm:$0xff]  ;;  %v57_v33 = vld [vmem:[#allocation5 + $0x68] sm:$0xff] }
  0x2d   :  { %204 = vpow2.f32 %v68_v11  ;;  %v84_v35 = vmul.f32 1.442695, %v56_v30  ;;  %v86_v36 = vmul.f32 1.442695, %v57_v33  ;;  %v58_v37 = vld [vmem:[#allocation5 + $0x70] sm:$0xff]  ;;  %v59_v40 = vld [vmem:[#allocation5 + $0x78] sm:$0xff] }
  0x2e   :  { %206 = vpow2.f32 %v70_v12  ;;  %v88_v42 = vmul.f32 1.442695, %v58_v37  ;;  %v90_v43 = vmul.f32 1.442695, %v59_v40  ;;  %v101_v57 = vld [vmem:[#allocation2] sm:$0xf] }
  0x2f   :  { %208 = vpow2.f32 %v72_v15  ;;  %s306_s1 = smov [#allocation7]  }
  0x30   :  { %210 = vpow2.f32 %v74_v16  ;;  %s150_s6 = sshll.u32 %s306_s1, 4  ;;  %s151_s6 = int_to_ptr.vmem [resolvable:$true] %s150_s6 }
  0x31   :  { %212 = vpow2.f32 %v76_v19  ;;  %s272_s7 = scalar_lea.vmem %s151_s6, 128  ;;  %p277_p3 = scmp.lt.s32.totalorder %s151_s6, %s151_s6 }
  0x32   :  { %214 = vpow2.f32 %v78_v20  ;;  %p273_p2 = scmp.ne.s32.totalorder %s151_s6, %s272_s7  ;;  %p278_p4 = scmp.lt.s32.totalorder %s272_s7, %s272_s7 }
  0x33   :  { %v197_v22 = vpop.eup %196  ;;  %216 = vpow2.f32 %v80_v27 }
  0x34   :  { %v199_v24 = vpop.eup %198  ;;  %218 = vpow2.f32 %v82_v29  ;;  %p279_p5 = por %p278_p4, %p277_p3 }
  0x35   :  { %v201_v25 = vpop.eup %200  ;;  %v92_v26 = vpack.c.bf16 %v199_v24, %v197_v22  ;;  %220 = vpow2.f32 %v84_v35 }
  0x36   :  { %v203_v28 = vpop.eup %202  ;;  %222 = vpow2.f32 %v86_v36  ;;  %p280_p6 = pnand %p279_p5, %p273_p2 }
  0x37   :  { %v205_v31 = vpop.eup %204  ;;  %170 = vmatpush3.bf16.msra.mxu0 %v92_v26  ;;  %v93_v32 = vpack.c.bf16 %v203_v28, %v201_v25  ;;  %224 = vpow2.f32 %v88_v42 }
  0x38   :  { %v207_v34 = vpop.eup %206  ;;  %171 = vmatprep.subr.bf16.mxu0 %v304_v0  ;;  %226 = vpow2.f32 %v90_v43 }
  0x39   :  { %v209_v38 = vpop.eup %208  ;;  %v94_v39 = vpack.c.bf16 %v207_v34, %v205_v31 }
  0x3a   :  { %v211_v41 = vpop.eup %210 }
  0x3b   :  { %172 = vmatpush3.bf16.msra.mxu0 %v93_v32  ;;  %v213_v44 = vpop.eup %212  ;;  %v95_v45 = vpack.c.bf16 %v211_v41, %v209_v38 }
  0x3c   :  { %173 = vmatprep.subr.bf16.mxu0 %v304_v0  ;;  %v215_v46 = vpop.eup %214 }
  0x3d   :  { %v217_v47 = vpop.eup %216  ;;  %v96_v48 = vpack.c.bf16 %v215_v46, %v213_v44 }
  0x3e   :  { %v219_v49 = vpop.eup %218 }
  0x3f   :  { %174 = vmatpush3.bf16.msra.mxu0 %v94_v39  ;;  %v221_v50 = vpop.eup %220  ;;  %v97_v51 = vpack.c.bf16 %v219_v49, %v217_v47 }
  0x40   :  { %175 = vmatprep.subr.bf16.mxu0 %v304_v0  ;;  %v223_v52 = vpop.eup %222 }
  0x41   :  { %v225_v53 = vpop.eup %224  ;;  %v98_v54 = vpack.c.bf16 %v223_v52, %v221_v50 }
  0x42   :  { %v227_v55 = vpop.eup %226 }
  0x43   :  { %176 = vmatpush3.bf16.msra.mxu0 %v95_v45  ;;  %v99_v56 = vpack.c.bf16 %v227_v55, %v225_v53 }
  0x44   :  { %177 = vmatprep.subr.bf16.mxu0 %v304_v0 }
  0x47   :  { %178 = vmatpush3.bf16.msra.mxu0 %v96_v48 }
  0x48   :  { %179 = vmatprep.subr.bf16.mxu0 %v304_v0 }
  0x4b   :  { %180 = vmatpush3.bf16.msra.mxu0 %v97_v51 }
  0x4c   :  { %181 = vmatprep.subr.bf16.mxu0 %v304_v0 }
  0x4f   :  { %182 = vmatpush3.bf16.msra.mxu0 %v98_v54 }
  0x50   :  { %183 = vmatprep.subr.bf16.mxu0 %v304_v0 }
  0x53   :  { %184 = vmatpush3.bf16.msra.mxu0 %v99_v56 }
  0x56   :  { %186 = vmatmul.mubr.bf16.vlgmr.msra.gmra.mrb[0].mxu0 %v101_v57 }
 0x129   :  { %v136_v58 = vpop.f32.mrb[0].mxu0 }
 0x12a   :  { %v187_v59 = vpop.f32.mrb[1].mxu0  ;;  %143 = vst [vmem:[#allocation7] sm:$0xff] %v136_v58 }
 0x12b   :  { %v139_v60 = vpop.f32.mrb[2].mxu0 }
 0x12c   :  { %v188_v61 = vpop.f32.mrb[3].mxu0 }
 0x12d   :  { %283 = shalt.err (!%p280_p6)
}
 0x12e   :  { %s284_s10 = scalar_lea.hbm %s376_s2, 128 }
 0x12f   :  { %p285_p7 = scmp.ne.s32.totalorder %s376_s2, %s284_s10  ;;  %p288_p8 = scmp.lt.u32.totalorder %s284_s10, %s376_s2 }
 0x131   :  { %p290_p9 = pnand %p288_p8, %p285_p7 }
 0x133   :  { %293 = shalt.err (!%p290_p9)
}
 0x134   :  { %153 = dma.vmem_to_hbm [thread:$0]  %s151_s6, 128, %s376_s2, [#allocation4]  }
 0x135   :  { %298 = dma.done.wait [#allocation4], 128  }
 0x136   :  { %299 = vsyncadd [#allocation4], 4294967168 }
 0x137   :  { %157 = vsyncpa [#allocation3], 1 }
 0x138   :  { %158 = vsyncpa [#allocation6], 1 }
 0x139   :  { %159 = vsyncpa [#allocation4], 1 }

</bundles_post_ra>
